<compile_context>
chip_gen: v7x
topology: tpu7x:2x2x1
jax: 0.10.0
libtpu: 0.0.40
codegen_flags: <defaults>
</compile_context>

<pallas_src>
import functools

import jax
import jax.numpy as jnp
from jax.experimental import pallas as pl
from jax.experimental.pallas import tpu as pltpu

_C_PAD = 128   # lane-dense channel width for features, MLP hidden, and outputs
_HID = 64      # logical hidden width of every GINConv MLP (padded to _C_PAD)


def _round_up(v, m):
    return (v + m - 1) // m * m


def _vmem_capacity_bytes():
    """Per-core VMEM capacity; conservative 64 MiB (v7x) fallback."""
    try:
        info = pltpu.get_tpu_info()
        cap = int(getattr(info, "vmem_capacity_bytes", 0) or 0)
        if cap > 0:
            return cap
    except Exception:
        pass
    return 64 << 20


def _resident_spec(block_shape, index_map):
    """Invariant operand: constant index_map + single buffering (saves VMEM)."""
    try:
        return pl.BlockSpec(block_shape, index_map, pipeline_mode=pl.Buffered(1))
    except TypeError:  # older BlockSpec signature: fall back to default buffering
        return pl.BlockSpec(block_shape, index_map)


def _streamed_footprint_bytes(tile_m, n_pad):
    """Per-step VMEM footprint of the streamed per-layer kernel."""
    a_tiles = 2 * tile_m * n_pad                      # int8 A row tile, 2 buffers
    a_upcast = 2 * tile_m * n_pad                     # in-kernel bf16 upcast temp
    x_res = n_pad * _C_PAD * 2                        # resident bf16 x (1 buffer)
    w_res = 2 * _C_PAD * _C_PAD * 2 + 2 * _C_PAD * 4  # bf16 weights + f32 biases
    o_tiles = 2 * tile_m * _C_PAD * 4                 # f32 out tile worst case
    return a_tiles + a_upcast + x_res + w_res + o_tiles + (2 << 20)


def _plan(num_nodes, force_streamed=False):
    """Choose fused-vs-streamed execution, padding, row tile and VMEM limit."""
    cap = _vmem_capacity_bytes()

    # --- fused: all 5 layers in one pallas_call, A resident in VMEM ---
    n_fused = max(_C_PAD, _round_up(num_nodes, _C_PAD))
    fused_bytes = (3 * n_fused * n_fused                  # int8 A + bf16 upcast scratch
                   + 2 * n_fused * _C_PAD * 2             # x ping-pong scratch (bf16)
                   + n_fused * _C_PAD * 2                 # x0 input (single-buffered)
                   + 2 * n_fused * _C_PAD * 4             # f32 output
                   + 4 * (_C_PAD * _C_PAD * 2 + _C_PAD * 4)  # per-layer weights, 2-deep
                   + (2 << 20))                           # headroom
    if (not force_streamed) and fused_bytes <= min(cap // 2, 40 << 20):
        vmem_limit = int(min(fused_bytes + (16 << 20), cap - (8 << 20)))
        return "fused", n_fused, None, vmem_limit

    # --- streamed per-layer fallback (row-tiled int8 A stream) ---
    budget = min(int(cap * 0.75), 100 << 20)
    n_min = max(_C_PAD, _round_up(num_nodes, _C_PAD))
    tile_m, n_pad = _C_PAD, n_min
    for cand in (1024, 512, 256, 128):
        cand_n = _round_up(max(num_nodes, cand), cand)
        if cand <= n_min and _streamed_footprint_bytes(cand, cand_n) <= budget:
            tile_m, n_pad = cand, cand_n
            break
    vmem_limit = int(min(_streamed_footprint_bytes(tile_m, n_pad) + (16 << 20),
                         cap - (8 << 20)))
    return "streamed", n_pad, tile_m, vmem_limit


# ---------------------------------------------------------------------------
# Fused 5-layer kernel: grid=(num_layers,), A resident, x ping-ponged in VMEM.
# ---------------------------------------------------------------------------
def _gin_fused_kernel(a_ref, x0_ref, w1_ref, b1_ref, w2_ref, b2_ref, o_ref,
                      a_bf, xbuf):
    l = pl.program_id(0)

    @pl.when(l == 0)
    def _():
        # One-time: upcast int8 adjacency to bf16 for the MXU, load x0.
        a_bf[...] = a_ref[...].astype(jnp.bfloat16)
        xbuf[0] = x0_ref[...]

    slot = l % 2
    x_in = xbuf[slot]                                    # bf16 (n_pad, 128)
    # GIN sum aggregation (eps = 0): h_i = x_i + sum_j x_j ; f32 accumulation.
    agg = jnp.dot(a_bf[...], x_in, preferred_element_type=jnp.float32)
    h16 = (x_in.astype(jnp.float32) + agg).astype(jnp.bfloat16)
    # MLP([C_in, 64, C_out], norm=None): Linear -> ReLU -> Linear (128-padded).
    y1 = jnp.maximum(
        jnp.dot(h16, w1_ref[0], preferred_element_type=jnp.float32) + b1_ref[0],
        0.0)
    y2 = (jnp.dot(y1.astype(jnp.bfloat16), w2_ref[0],
                  preferred_element_type=jnp.float32) + b2_ref[0])
    y = jnp.maximum(y2, 0.0)                             # outer x.relu()
    xbuf[1 - slot] = y.astype(jnp.bfloat16)

    @pl.when(l == pl.num_programs(0) - 1)
    def _():
        o_ref[...] = y.astype(o_ref.dtype)


def _gin_fused_call(adj_i8, x0, w1s, b1s, w2s, b2s, *, n_pad, num_layers,
                    vmem_limit):
    flops = num_layers * (2 * n_pad * n_pad * _C_PAD + 4 * n_pad * _C_PAD * _C_PAD)
    bytes_accessed = (n_pad * n_pad                       # A int8, read ONCE
                      + n_pad * _C_PAD * 2                # x0 bf16
                      + n_pad * _C_PAD * 4                # out f32
                      + num_layers * (2 * _C_PAD * _C_PAD * 2 + 2 * _C_PAD * 4))
    return pl.pallas_call(
        _gin_fused_kernel,
        out_shape=jax.ShapeDtypeStruct((n_pad, _C_PAD), jnp.float32),
        grid=(num_layers,),
        in_specs=[
            _resident_spec((n_pad, n_pad), lambda l: (0, 0)),        # A (int8)
            _resident_spec((n_pad, _C_PAD), lambda l: (0, 0)),       # x0 (bf16)
            pl.BlockSpec((1, _C_PAD, _C_PAD), lambda l: (l, 0, 0)),  # W1[l] (bf16)
            pl.BlockSpec((1, 1, _C_PAD), lambda l: (l, 0, 0)),       # b1[l] (f32)
            pl.BlockSpec((1, _C_PAD, _C_PAD), lambda l: (l, 0, 0)),  # W2[l] (bf16)
            pl.BlockSpec((1, 1, _C_PAD), lambda l: (l, 0, 0)),       # b2[l] (f32)
        ],
        out_specs=pl.BlockSpec((n_pad, _C_PAD), lambda l: (0, 0)),
        scratch_shapes=[
            pltpu.VMEM((n_pad, n_pad), jnp.bfloat16),       # A upcast (once)
            pltpu.VMEM((2, n_pad, _C_PAD), jnp.bfloat16),   # x ping-pong
        ],
        compiler_params=pltpu.CompilerParams(
            dimension_semantics=("arbitrary",),              # layer dependency
            vmem_limit_bytes=vmem_limit),
        cost_estimate=pl.CostEstimate(flops=int(flops), transcendentals=0,
                                      bytes_accessed=int(bytes_accessed)),
    )(adj_i8, x0, w1s, b1s, w2s, b2s)


# ---------------------------------------------------------------------------
# Streamed per-layer kernel (large graphs): row-tiled int8 A stream.
# ---------------------------------------------------------------------------
def _gin_layer_kernel(a_ref, x_ref, w1_ref, b1_ref, w2_ref, b2_ref, o_ref):
    tile_m = a_ref.shape[0]
    row0 = pl.multiple_of(pl.program_id(0) * tile_m, tile_m)
    # int8 A tile -> bf16 in-kernel, MXU matmul, f32 accumulation.
    agg = jnp.dot(a_ref[...].astype(jnp.bfloat16), x_ref[...],
                  preferred_element_type=jnp.float32)
    # Self term sliced from the resident x (no separate x_self DMA stream).
    x_self = x_ref[pl.ds(row0, tile_m), :]
    h16 = (x_self.astype(jnp.float32) + agg).astype(jnp.bfloat16)
    y1 = jnp.maximum(
        jnp.dot(h16, w1_ref[...], preferred_element_type=jnp.float32) + b1_ref[...],
        0.0)
    y2 = (jnp.dot(y1.astype(jnp.bfloat16), w2_ref[...],
                  preferred_element_type=jnp.float32) + b2_ref[...])
    o_ref[...] = jnp.maximum(y2, 0.0).astype(o_ref.dtype)


def _gin_layer_call(adj_i8, x_all, w1, b1, w2, b2, *, tile_m, vmem_limit,
                    out_dtype):
    n_pad = x_all.shape[0]
    grid = (n_pad // tile_m,)
    flops = 2 * n_pad * n_pad * _C_PAD + 4 * n_pad * _C_PAD * _C_PAD
    bytes_accessed = (n_pad * n_pad                       # A int8
                      + n_pad * _C_PAD * 2                # x bf16
                      + n_pad * _C_PAD * jnp.dtype(out_dtype).itemsize
                      + 2 * _C_PAD * _C_PAD * 2 + 2 * _C_PAD * 4)
    return pl.pallas_call(
        _gin_layer_kernel,
        out_shape=jax.ShapeDtypeStruct((n_pad, _C_PAD), out_dtype),
        grid=grid,
        in_specs=[
            pl.BlockSpec((tile_m, n_pad), lambda i: (i, 0)),     # A row tile, streamed
            _resident_spec((n_pad, _C_PAD), lambda i: (0, 0)),   # x, resident
            _resident_spec((_C_PAD, _C_PAD), lambda i: (0, 0)),  # W1
            _resident_spec((1, _C_PAD), lambda i: (0, 0)),       # b1
            _resident_spec((_C_PAD, _C_PAD), lambda i: (0, 0)),  # W2
            _resident_spec((1, _C_PAD), lambda i: (0, 0)),       # b2
        ],
        out_specs=pl.BlockSpec((tile_m, _C_PAD), lambda i: (i, 0)),
        compiler_params=pltpu.CompilerParams(
            dimension_semantics=("parallel",),
            vmem_limit_bytes=vmem_limit),
        cost_estimate=pl.CostEstimate(flops=int(flops), transcendentals=0,
                                      bytes_accessed=int(bytes_accessed)),
    )(adj_i8, x_all, w1, b1, w2, b2)


# ---------------------------------------------------------------------------
# Parameters & forward
# ---------------------------------------------------------------------------
def init_gin_params(key, in_channels, out_channels, hidden=_HID, num_layers=5):
    """Stacked, lane-dense (128-padded) parameters mirroring
    MLP([in, 64, out_c], norm=None) per layer.  Padded lanes/rows are exactly
    zero so they stay zero through ReLU; weights stored bf16, biases f32."""
    w1s, b1s, w2s, b2s = [], [], [], []
    c_in = in_channels
    for i in range(num_layers):
        c_out = hidden if i != num_layers - 1 else out_channels
        key, k1, k2, k3, k4 = jax.random.split(key, 5)
        lim1 = 1.0 / (c_in ** 0.5)
        lim2 = 1.0 / (hidden ** 0.5)
        w1 = jax.random.uniform(k1, (c_in, hidden), jnp.float32, -lim1, lim1)
        b1 = jax.random.uniform(k2, (hidden,), jnp.float32, -lim1, lim1)
        w2 = jax.random.uniform(k3, (hidden, c_out), jnp.float32, -lim2, lim2)
        b2 = jax.random.uniform(k4, (c_out,), jnp.float32, -lim2, lim2)
        w1s.append(jnp.zeros((_C_PAD, _C_PAD), jnp.float32).at[:c_in, :hidden].set(w1))
        b1s.append(jnp.zeros((1, _C_PAD), jnp.float32).at[0, :hidden].set(b1))
        w2s.append(jnp.zeros((_C_PAD, _C_PAD), jnp.float32).at[:hidden, :c_out].set(w2))
        b2s.append(jnp.zeros((1, _C_PAD), jnp.float32).at[0, :c_out].set(b2))
        c_in = hidden
    return (jnp.stack(w1s).astype(jnp.bfloat16), jnp.stack(b1s),
            jnp.stack(w2s).astype(jnp.bfloat16), jnp.stack(b2s))


@functools.partial(jax.jit,
                   static_argnames=("num_nodes", "out_channels", "force_streamed"))
def gin_forward(x, edge_index, params, num_nodes, out_channels,
                force_streamed=False):
    """Full GIN forward. Returns (out_per_layer, intermediate_per_layer, x_final)."""
    in_channels = x.shape[1]
    w1s, b1s, w2s, b2s = params
    num_layers = w1s.shape[0]
    mode, n_pad, tile_m, vmem_limit = _plan(num_nodes, force_streamed)

    # Dense adjacency built DIRECTLY in int8:  A[dst, src] += 1.
    # Out-of-range / negative edge indices are masked out (contribute 0).
    src, dst = edge_index[0], edge_index[1]
    valid = (src >= 0) & (src < num_nodes) & (dst >= 0) & (dst < num_nodes)
    src_c = jnp.where(valid, src, 0).astype(jnp.int32)
    dst_c = jnp.where(valid, dst, 0).astype(jnp.int32)
    adj = jnp.zeros((n_pad, n_pad), jnp.int8).at[dst_c, src_c].add(
        valid.astype(jnp.int8))

    # Lane-dense, row-padded node features in bf16.
    x_pad = jnp.zeros((n_pad, _C_PAD), jnp.bfloat16)
    x_pad = x_pad.at[:num_nodes, :in_channels].set(x.astype(jnp.bfloat16))

    if mode == "fused":
        y = _gin_fused_call(adj, x_pad, w1s, b1s, w2s, b2s,
                            n_pad=n_pad, num_layers=num_layers,
                            vmem_limit=vmem_limit)
    else:
        y = x_pad
        for li in range(num_layers):
            out_dtype = jnp.float32 if li == num_layers - 1 else jnp.bfloat16
            y = _gin_layer_call(adj, y, w1s[li], b1s[li], w2s[li], b2s[li],
                                tile_m=tile_m, vmem_limit=vmem_limit,
                                out_dtype=out_dtype)

    x_final = y[:num_nodes, :out_channels]
    out_per_layer = {}
    intermediate_result_per_layer = {}   # save_int=False -> empty
    # TODO(synk): the PyTorch module returns None as its first element and
    # discards x; we also return x_final so the kernel output is observable.
    return out_per_layer, intermediate_result_per_layer, x_final


if __name__ == "__main__":
    key = jax.random.PRNGKey(0)

    # Small synthetic graph: 16 nodes, in_channels=4, out_channels=8.
    num_nodes, in_channels, out_channels = 16, 4, 8
    key, kx, ke = jax.random.split(key, 3)
    x = jax.random.normal(kx, (num_nodes, in_channels), jnp.float32)

    # Deterministic edge set: ring edges both directions + a few extras.
    ring_src = jnp.arange(num_nodes)
    ring_dst = (ring_src + 1) % num_nodes
    extra_src = jax.random.randint(ke, (8,), 0, num_nodes)
    extra_dst = (extra_src * 5 + 3) % num_nodes
    src = jnp.concatenate([ring_src, ring_dst, extra_src])
    dst = jnp.concatenate([ring_dst, ring_src, extra_dst])
    edge_index = jnp.stack([src, dst]).astype(jnp.int32)

    params = init_gin_params(key, in_channels, out_channels)

    # Fused 5-layer kernel (A resident in VMEM) — the primary path here.
    _, _, x_fused = gin_forward(x, edge_index, params,
                                num_nodes=num_nodes, out_channels=out_channels)
    # Streamed per-layer kernel (row-tiled int8 A), forced for coverage.
    _, _, x_stream = gin_forward(x, edge_index, params,
                                 num_nodes=num_nodes, out_channels=out_channels,
                                 force_streamed=True)
    jax.block_until_ready((x_fused, x_stream))

    assert x_fused.shape == (num_nodes, out_channels)
    assert x_stream.shape == (num_nodes, out_channels)
    assert bool(jnp.all(jnp.isfinite(x_fused)))
    assert bool(jnp.all(x_fused >= 0.0))          # final ReLU

    # Pure-JAX f32 reference using the same (bf16-rounded) weights/inputs.
    w1s, b1s, w2s, b2s = params
    h = jnp.zeros((num_nodes, _C_PAD), jnp.float32).at[:, :in_channels].set(
        x.astype(jnp.bfloat16).astype(jnp.float32))
    A = jnp.zeros((num_nodes, num_nodes), jnp.float32).at[dst, src].add(1.0)
    for l in range(w1s.shape[0]):
        t = h + A @ h
        t = jnp.maximum(t @ w1s[l].astype(jnp.float32) + b1s[l], 0.0)
        t = t @ w2s[l].astype(jnp.float32) + b2s[l]
        h = jnp.maximum(t, 0.0)
    ref = h[:, :out_channels]

    def rel_err(a, b):
        return float(jnp.linalg.norm(a.astype(jnp.float32) - b)
                     / (jnp.linalg.norm(b) + 1e-6))

    assert rel_err(x_fused, ref) < 0.1, rel_err(x_fused, ref)
    assert rel_err(x_stream, ref) < 0.1, rel_err(x_stream, ref)
    assert rel_err(x_fused, x_stream.astype(jnp.float32)) < 1e-2
    print("KERNEL_OK")
</pallas_src>

<mosaic_0001>
module attributes {stable_mosaic.version = 11 : i64} {
  func.func @_gin_fused_kernel(%arg0: i32, %arg1: memref<128x128xi8, #tpu.memory_space<vmem>>, %arg2: memref<128x128xbf16, #tpu.memory_space<vmem>>, %arg3: memref<1x128x128xbf16, #tpu.memory_space<vmem>>, %arg4: memref<1x1x128xf32, #tpu.memory_space<vmem>>, %arg5: memref<1x128x128xbf16, #tpu.memory_space<vmem>>, %arg6: memref<1x1x128xf32, #tpu.memory_space<vmem>>, %arg7: memref<128x128xf32, #tpu.memory_space<vmem>>, %arg8: memref<128x128xbf16, #tpu.memory_space<vmem>>, %arg9: memref<2x128x128xbf16, #tpu.memory_space<vmem>>) attributes {dimension_semantics = [#tpu.dimension_semantics<arbitrary>], iteration_bounds = array<i64: 5>, scalar_prefetch = 0 : i64, scratch_operands = 2 : i64, tpu.core_type = #tpu.core_type<tc>, window_params = [{pipeline_mode = #tpu.pipeline_mode<synchronous>, transform_indices = @transform_0, window_bounds = array<i64: 128, 128>}, {pipeline_mode = #tpu.pipeline_mode<synchronous>, transform_indices = @transform_1, window_bounds = array<i64: 128, 128>}, {transform_indices = @transform_2, window_bounds = array<i64: 1, 128, 128>}, {transform_indices = @transform_3, window_bounds = array<i64: 1, 1, 128>}, {transform_indices = @transform_4, window_bounds = array<i64: 1, 128, 128>}, {transform_indices = @transform_5, window_bounds = array<i64: 1, 1, 128>}, {pipeline_mode = #tpu.pipeline_mode<synchronous>, transform_indices = @transform_6, window_bounds = array<i64: 128, 128>}]} {
    %c0_i32 = arith.constant 0 : i32
    %0 = arith.cmpi eq, %arg0, %c0_i32 : i32
    %1 = arith.extui %0 : i1 to i32
    %c0_i32_0 = arith.constant 0 : i32
    %2 = arith.cmpi ne, %1, %c0_i32_0 : i32
    scf.if %2 {
      %c0_28 = arith.constant 0 : index
      %c0_29 = arith.constant 0 : index
      %49 = vector.load %arg1[%c0_28, %c0_29] : memref<128x128xi8, #tpu.memory_space<vmem>>, vector<128x128xi8>
      %50 = arith.sitofp %49 : vector<128x128xi8> to vector<128x128xbf16>
      %c0_30 = arith.constant 0 : index
      %c0_31 = arith.constant 0 : index
      %51 = vector.load %arg8[%c0_30, %c0_31] : memref<128x128xbf16, #tpu.memory_space<vmem>>, vector<128x128xbf16>
      tpu.vector_store %arg8[%c0_30, %c0_31], %50 {strides = array<i32>} : memref<128x128xbf16, #tpu.memory_space<vmem>>, vector<128x128xbf16>,
      %c0_32 = arith.constant 0 : index
      %c0_33 = arith.constant 0 : index
      %52 = vector.load %arg2[%c0_32, %c0_33] : memref<128x128xbf16, #tpu.memory_space<vmem>>, vector<128x128xbf16>
      %c0_34 = arith.constant 0 : index
      %c0_35 = arith.constant 0 : index
      %c0_36 = arith.constant 0 : index
      %53 = vector.load %arg9[%c0_34, %c0_35, %c0_36] : memref<2x128x128xbf16, #tpu.memory_space<vmem>>, vector<1x128x128xbf16>
      %54 = vector.shape_cast %53 : vector<1x128x128xbf16> to vector<128x128xbf16>
      %55 = vector.shape_cast %52 : vector<128x128xbf16> to vector<1x128x128xbf16>
      tpu.vector_store %arg9[%c0_34, %c0_35, %c0_36], %55 {strides = array<i32>} : memref<2x128x128xbf16, #tpu.memory_space<vmem>>, vector<1x128x128xbf16>,
    } else {
    }
    %c2_i32 = arith.constant 2 : i32
    %c0_i32_1 = arith.constant 0 : i32
    %3 = arith.cmpi eq, %c2_i32, %c0_i32_1 : i32
    %c1_i32 = arith.constant 1 : i32
    %4 = arith.select %3, %c1_i32, %c2_i32 : i32
    %5 = arith.remsi %arg0, %4 : i32
    %c0_i32_2 = arith.constant 0 : i32
    %6 = arith.cmpi ne, %5, %c0_i32_2 : i32
    %c0_i32_3 = arith.constant 0 : i32
    %7 = arith.cmpi slt, %5, %c0_i32_3 : i32
    %c0_i32_4 = arith.constant 0 : i32
    %8 = arith.cmpi slt, %4, %c0_i32_4 : i32
    %9 = arith.xori %7, %8 : i1
    %10 = arith.andi %9, %6 : i1
    %11 = arith.addi %5, %4 : i32
    %12 = arith.select %10, %11, %5 : i32
    %13 = arith.index_cast %12 : i32 to index
    %c0 = arith.constant 0 : index
    %c0_5 = arith.constant 0 : index
    %14 = vector.load %arg9[%13, %c0, %c0_5] : memref<2x128x128xbf16, #tpu.memory_space<vmem>>, vector<1x128x128xbf16>
    %15 = vector.shape_cast %14 : vector<1x128x128xbf16> to vector<128x128xbf16>
    %c0_6 = arith.constant 0 : index
    %c0_7 = arith.constant 0 : index
    %16 = vector.load %arg8[%c0_6, %c0_7] : memref<128x128xbf16, #tpu.memory_space<vmem>>, vector<128x128xbf16>
    %cst = arith.constant dense<0.000000e+00> : vector<128x128xf32>
    %17 = tpu.matmul %16, %15, %cst {dimension_numbers = #tpu.dot_dimension_numbers<[1], [0], [0], [1], [0, 0, 1, 1], [], []>} : vector<128x128xbf16>, vector<128x128xbf16>, vector<128x128xf32> -> vector<128x128xf32>
    %18 = arith.extf %15 : vector<128x128xbf16> to vector<128x128xf32>
    %19 = arith.addf %18, %17 : vector<128x128xf32>
    %20 = arith.truncf %19 : vector<128x128xf32> to vector<128x128xbf16>
    %c0_8 = arith.constant 0 : index
    %c0_9 = arith.constant 0 : index
    %c0_10 = arith.constant 0 : index
    %21 = vector.load %arg3[%c0_8, %c0_9, %c0_10] : memref<1x128x128xbf16, #tpu.memory_space<vmem>>, vector<1x128x128xbf16>
    %22 = vector.shape_cast %21 : vector<1x128x128xbf16> to vector<128x128xbf16>
    %cst_11 = arith.constant dense<0.000000e+00> : vector<128x128xf32>
    %23 = tpu.matmul %20, %22, %cst_11 {dimension_numbers = #tpu.dot_dimension_numbers<[1], [0], [0], [1], [0, 0, 1, 1], [], []>} : vector<128x128xbf16>, vector<128x128xbf16>, vector<128x128xf32> -> vector<128x128xf32>
    %c0_12 = arith.constant 0 : index
    %c0_13 = arith.constant 0 : index
    %c0_14 = arith.constant 0 : index
    %24 = vector.load %arg4[%c0_12, %c0_13, %c0_14] : memref<1x1x128xf32, #tpu.memory_space<vmem>>, vector<1x1x128xf32>
    %25 = vector.shape_cast %24 : vector<1x1x128xf32> to vector<1x128xf32>
    %26 = vector.broadcast %25 : vector<1x128xf32> to vector<128x128xf32>
    %27 = arith.addf %23, %26 : vector<128x128xf32>
    %cst_15 = arith.constant 0.000000e+00 : f32
    %28 = vector.broadcast %cst_15 : f32 to vector<128x128xf32>
    %29 = arith.maximumf %27, %28 : vector<128x128xf32>
    %30 = arith.truncf %29 : vector<128x128xf32> to vector<128x128xbf16>
    %c0_16 = arith.constant 0 : index
    %c0_17 = arith.constant 0 : index
    %c0_18 = arith.constant 0 : index
    %31 = vector.load %arg5[%c0_16, %c0_17, %c0_18] : memref<1x128x128xbf16, #tpu.memory_space<vmem>>, vector<1x128x128xbf16>
    %32 = vector.shape_cast %31 : vector<1x128x128xbf16> to vector<128x128xbf16>
    %cst_19 = arith.constant dense<0.000000e+00> : vector<128x128xf32>
    %33 = tpu.matmul %30, %32, %cst_19 {dimension_numbers = #tpu.dot_dimension_numbers<[1], [0], [0], [1], [0, 0, 1, 1], [], []>} : vector<128x128xbf16>, vector<128x128xbf16>, vector<128x128xf32> -> vector<128x128xf32>
    %c0_20 = arith.constant 0 : index
    %c0_21 = arith.constant 0 : index
    %c0_22 = arith.constant 0 : index
    %34 = vector.load %arg6[%c0_20, %c0_21, %c0_22] : memref<1x1x128xf32, #tpu.memory_space<vmem>>, vector<1x1x128xf32>
    %35 = vector.shape_cast %34 : vector<1x1x128xf32> to vector<1x128xf32>
    %36 = vector.broadcast %35 : vector<1x128xf32> to vector<128x128xf32>
    %37 = arith.addf %33, %36 : vector<128x128xf32>
    %cst_23 = arith.constant 0.000000e+00 : f32
    %38 = vector.broadcast %cst_23 : f32 to vector<128x128xf32>
    %39 = arith.maximumf %37, %38 : vector<128x128xf32>
    %40 = arith.truncf %39 : vector<128x128xf32> to vector<128x128xbf16>
    %c1_i32_24 = arith.constant 1 : i32
    %41 = arith.subi %c1_i32_24, %12 : i32
    %42 = arith.index_cast %41 : i32 to index
    %c0_25 = arith.constant 0 : index
    %c0_26 = arith.constant 0 : index
    %43 = vector.load %arg9[%42, %c0_25, %c0_26] : memref<2x128x128xbf16, #tpu.memory_space<vmem>>, vector<1x128x128xbf16>
    %44 = vector.shape_cast %43 : vector<1x128x128xbf16> to vector<128x128xbf16>
    %45 = vector.shape_cast %40 : vector<128x128xbf16> to vector<1x128x128xbf16>
    tpu.vector_store %arg9[%42, %c0_25, %c0_26], %45 {strides = array<i32>} : memref<2x128x128xbf16, #tpu.memory_space<vmem>>, vector<1x128x128xbf16>,
    %c4_i32 = arith.constant 4 : i32
    %46 = arith.cmpi eq, %arg0, %c4_i32 : i32
    %47 = arith.extui %46 : i1 to i32
    %c0_i32_27 = arith.constant 0 : i32
    %48 = arith.cmpi ne, %47, %c0_i32_27 : i32
    scf.if %48 {
      %c0_28 = arith.constant 0 : index
      %c0_29 = arith.constant 0 : index
      %49 = vector.load %arg7[%c0_28, %c0_29] : memref<128x128xf32, #tpu.memory_space<vmem>>, vector<128x128xf32>
      tpu.vector_store %arg7[%c0_28, %c0_29], %39 {strides = array<i32>} : memref<128x128xf32, #tpu.memory_space<vmem>>, vector<128x128xf32>,
    } else {
    }
    return
  }
  func.func @transform_0(%arg0: i32) -> (i32, i32) {
    %c0_i32 = arith.constant 0 : i32
    %c0_i32_0 = arith.constant 0 : i32
    %c0_i32_1 = arith.constant 0 : i32
    return %c0_i32, %c0_i32_0 : i32, i32
  }
  func.func @transform_1(%arg0: i32) -> (i32, i32) {
    %c0_i32 = arith.constant 0 : i32
    %c0_i32_0 = arith.constant 0 : i32
    %c0_i32_1 = arith.constant 0 : i32
    return %c0_i32, %c0_i32_0 : i32, i32
  }
  func.func @transform_2(%arg0: i32) -> (i32, i32, i32) {
    %c0_i32 = arith.constant 0 : i32
    %c0_i32_0 = arith.constant 0 : i32
    %c0_i32_1 = arith.constant 0 : i32
    return %arg0, %c0_i32, %c0_i32_0 : i32, i32, i32
  }
  func.func @transform_3(%arg0: i32) -> (i32, i32, i32) {
    %c0_i32 = arith.constant 0 : i32
    %c0_i32_0 = arith.constant 0 : i32
    %c0_i32_1 = arith.constant 0 : i32
    return %arg0, %c0_i32, %c0_i32_0 : i32, i32, i32
  }
  func.func @transform_4(%arg0: i32) -> (i32, i32, i32) {
    %c0_i32 = arith.constant 0 : i32
    %c0_i32_0 = arith.constant 0 : i32
    %c0_i32_1 = arith.constant 0 : i32
    return %arg0, %c0_i32, %c0_i32_0 : i32, i32, i32
  }
  func.func @transform_5(%arg0: i32) -> (i32, i32, i32) {
    %c0_i32 = arith.constant 0 : i32
    %c0_i32_0 = arith.constant 0 : i32
    %c0_i32_1 = arith.constant 0 : i32
    return %arg0, %c0_i32, %c0_i32_0 : i32, i32, i32
  }
  func.func @transform_6(%arg0: i32) -> (i32, i32) {
    %c0_i32 = arith.constant 0 : i32
    %c0_i32_0 = arith.constant 0 : i32
    %c0_i32_1 = arith.constant 0 : i32
    return %c0_i32, %c0_i32_0 : i32, i32
  }
}

</mosaic_0001>

<bundles_post_ra>
// kernel: gin_forward.1
= control target key start
LH: loop header
LB: loop body
LE: loop exit
PB: predicated region body
PF: predicated region fallthrough
CT: control target
= control target key end

     0   :  { %s1388_s21 = smov 0   ;;  %s1658_s0 = inlined_call_operand.vmem [shape: s8[128,128], index: 0, kind: input, shape index: {}]   ;;  %s1659_s1 = inlined_call_operand.vmem [shape: bf16[128,128], index: 1, kind: input, shape index: {}]   ;;  %s1660_s2 = inlined_call_operand.vmem [shape: bf16[5,128,128], index: 2, kind: input, shape index: {}]   ;;  %s1661_s3 = inlined_call_operand.vmem [shape: f32[5,1,128], index: 3, kind: input, shape index: {}]   ;;  %s1662_s4 = inlined_call_operand.vmem [shape: bf16[5,128,128], index: 4, kind: input, shape index: {}]   ;;  %s1663_s5 = inlined_call_operand.vmem [shape: f32[5,1,128], index: 5, kind: input, shape index: {}]   ;;  %s1664_s6 = inlined_call_operand.vmem [shape: f32[128,128], index: 6, kind: output, shape index: {}]  }
   0x1 LB: > { %s1394_s22 = sadd.s32 4294967295, %s1351_s21   ;;  %p1099_p0 = scmp.ge.s32.totalorder %s1351_s21, 1  ;;  %s1351_s21 = sphi %s1388_s21, %s16_s21  }
   0x2   : > { %p233_p1 = scmp.lt.s32.totalorder %s1351_s21, 6 }
   0x4   : > { %p234_p2 = pnand %p1099_p0, %p233_p1 }
   0x5   : > { %p269_p3 = scmp.lt.s32.totalorder (!%p234_p2), %s1394_s22, 4  ;;  %p1104_p4 = scmp.ne.s32.totalorder (!%p234_p2), %s1394_s22, 0 }
   0x6   : > { %237 = sbr.rel (%p234_p2) target bundleno = 759 (0x2f7), region = 44 }
   0xd   : > { %s1400_s23 = scalar_select %p269_p3, %s1394_s22, 4 }
   0xe   : > { %289 = sbr.rel (%p1104_p4) target bundleno = 28 (0x1c), region = 48  ;;  %v290_v0 = vld [vmem:[%s1658_s0] sm:$0x3] (!%p1104_p4)  ;;  %v291_v1 = vld [vmem:[%s1658_s0 + $0x2] sm:$0x3] (!%p1104_p4)  ;;  %v1322_v40 = vld [vmem:[%s1659_s1 + $0x8] sm:$0xff] (!%p1104_p4)  }
   0xf   : > { %s1149_s24 = sshll.u32 %s1400_s23, 6  ;;  %s276_s27 = scalar_lea.vmem %s1661_s3, %s1400_s23  ;;  %v292_v2 = vld [vmem:[%s1658_s0 + $0x4] sm:$0x3] (!%p1104_p4)  ;;  %v306_v3 = vunpack.c.l.s8.bf16 (!%p1104_p4), %v290_v0  ;;  %v307_v4 = vunpack.c.l.s8.bf16 (!%p1104_p4), %v291_v1  ;;  %v293_v5 = vld [vmem:[%s1658_s0 + $0x6] sm:$0x3] (!%p1104_p4)  ;;  %v1323_v42 = vld [vmem:[%s1659_s1 + $0x10] sm:$0xff] (!%p1104_p4)  }
  0x10   : > { %s1410_s30 = scalar_lea.vmem %s1660_s2, %s1149_s24  ;;  %s1415_s9 = scalar_lea.vmem %s1662_s4, %s1149_s24  ;;  %v308_v6 = vunpack.c.l.s8.bf16 (!%p1104_p4), %v292_v2  ;;  %v294_v7 = vld [vmem:[%s1658_s0 + $0x8] sm:$0x3] (!%p1104_p4)  ;;  %v295_v8 = vld [vmem:[%s1658_s0 + $0xa] sm:$0x3] (!%p1104_p4)  ;;  %v309_v9 = vunpack.c.l.s8.bf16 (!%p1104_p4), %v293_v5  ;;  %v296_v12 = vld [vmem:[%s1658_s0 + $0xc] sm:$0x3] (!%p1104_p4) }
  0x11   : > { %s284_s12 = scalar_lea.vmem %s1663_s5, %s1400_s23  ;;  %v310_v10 = vunpack.c.l.s8.bf16 (!%p1104_p4), %v294_v7  ;;  %v311_v11 = vunpack.c.l.s8.bf16 (!%p1104_p4), %v295_v8  ;;  %v297_v13 = vld [vmem:[%s1658_s0 + $0xe] sm:$0x3] (!%p1104_p4)  ;;  %v298_v14 = vld [vmem:[%s1658_s0 + $0x10] sm:$0x3] (!%p1104_p4)  ;;  %v1105_v15 = vcombine.low (!%p1104_p4), %v306_v3, %v307_v4  ;;  %v312_v16 = vunpack.c.l.s8.bf16 (!%p1104_p4), %v296_v12  ;;  %v299_v18 = vld [vmem:[%s1658_s0 + $0x12] sm:$0x3] (!%p1104_p4) }
  0x12   : > { %v313_v17 = vunpack.c.l.s8.bf16 (!%p1104_p4), %v297_v13  ;;  %v314_v19 = vunpack.c.l.s8.bf16 (!%p1104_p4), %v298_v14  ;;  %v300_v20 = vld [vmem:[%s1658_s0 + $0x14] sm:$0x3] (!%p1104_p4)  ;;  %v301_v21 = vld [vmem:[%s1658_s0 + $0x16] sm:$0x3] (!%p1104_p4)  ;;  %v1106_v22 = vcombine.low (!%p1104_p4), %v308_v6, %v309_v9  ;;  %v315_v24 = vunpack.c.l.s8.bf16 (!%p1104_p4), %v299_v18  ;;  %v302_v26 = vld [vmem:[%s1658_s0 + $0x18] sm:$0x3] (!%p1104_p4) }
  0x13   : > { %v1107_v23 = vcombine.low (!%p1104_p4), %v310_v10, %v311_v11  ;;  %v316_v25 = vunpack.c.l.s8.bf16 (!%p1104_p4), %v300_v20  ;;  %v303_v27 = vld [vmem:[%s1658_s0 + $0x1a] sm:$0x3] (!%p1104_p4)  ;;  %v304_v28 = vld [vmem:[%s1658_s0 + $0x1c] sm:$0x3] (!%p1104_p4)  ;;  %370 = vst [vmem:[#allocation2] sm:$0xff] (!%p1104_p4), %v1105_v15  ;;  %v317_v30 = vunpack.c.l.s8.bf16 (!%p1104_p4), %v301_v21  ;;  %v318_v31 = vunpack.c.l.s8.bf16 (!%p1104_p4), %v302_v26  ;;  %v1321_v37 = vld [vmem:[%s1659_s1] sm:$0xff] (!%p1104_p4)  }
  0x14   : > { %v1108_v29 = vcombine.low (!%p1104_p4), %v312_v16, %v313_v17  ;;  %v319_v32 = vunpack.c.l.s8.bf16 (!%p1104_p4), %v303_v27  ;;  %v305_v33 = vld [vmem:[%s1658_s0 + $0x1e] sm:$0x3] (!%p1104_p4)  ;;  %371 = vst [vmem:[#allocation2 + $0x8] sm:$0xff] (!%p1104_p4), %v1106_v22  ;;  %v1109_v34 = vcombine.low (!%p1104_p4), %v314_v19, %v315_v24  ;;  %v320_v35 = vunpack.c.l.s8.bf16 (!%p1104_p4), %v304_v28  ;;  %442 = vst [vmem:[#allocation3] sm:$0xff] (!%p1104_p4), %v1321_v37  ;;  %v1325_v44 = vld [vmem:[%s1659_s1 + $0x20] sm:$0xff] (!%p1104_p4)  }
  0x15   : > { %372 = vst [vmem:[#allocation2 + $0x10] sm:$0xff] %v1107_v23  ;;  %v321_v36 = vunpack.c.l.s8.bf16 %v305_v33  ;;  %v1110_v38 = vcombine.low %v316_v25, %v317_v30  ;;  %443 = vst [vmem:[#allocation3 + $0x8] sm:$0xff] %v1322_v40  ;;  %v1324_v43 = vld [vmem:[%s1659_s1 + $0x18] sm:$0xff]   ;;  %v1326_v45 = vld [vmem:[%s1659_s1 + $0x28] sm:$0xff]  }
  0x16   : > { %373 = vst [vmem:[#allocation2 + $0x18] sm:$0xff] %v1108_v29  ;;  %v1111_v39 = vcombine.low %v318_v31, %v319_v32  ;;  %374 = vst [vmem:[#allocation2 + $0x20] sm:$0xff] %v1109_v34  ;;  %v1327_v46 = vld [vmem:[%s1659_s1 + $0x30] sm:$0xff]   ;;  %v1328_v47 = vld [vmem:[%s1659_s1 + $0x38] sm:$0xff]  }
  0x17   : > { %v1112_v41 = vcombine.low %v320_v35, %v321_v36  ;;  %375 = vst [vmem:[#allocation2 + $0x28] sm:$0xff] %v1110_v38  ;;  %444 = vst [vmem:[#allocation3 + $0x10] sm:$0xff] %v1323_v42 }
  0x18   : > { %376 = vst [vmem:[#allocation2 + $0x30] sm:$0xff] %v1111_v39  ;;  %445 = vst [vmem:[#allocation3 + $0x18] sm:$0xff] %v1324_v43 }
  0x19   : > { %377 = vst [vmem:[#allocation2 + $0x38] sm:$0xff] %v1112_v41  ;;  %446 = vst [vmem:[#allocation3 + $0x20] sm:$0xff] %v1325_v44 }
  0x1a   : > { %447 = vst [vmem:[#allocation3 + $0x28] sm:$0xff] %v1326_v45  ;;  %448 = vst [vmem:[#allocation3 + $0x30] sm:$0xff] %v1327_v46 }
  0x1b   : > { %449 = vst [vmem:[#allocation3 + $0x38] sm:$0xff] %v1328_v47 }
  0x1c PF: > { %p450_p5 = scmp.lt.s32.totalorder %s1394_s22, 0  ;;  %s451_s8 = ssub.s32 0, %s1394_s22  ;;  %v1329_v49 = vld [vmem:[%s1410_s30] sm:$0xff]   ;;  %v1330_v50 = vld [vmem:[%s1410_s30 + $0x8] sm:$0xff]   ;;  %v1331_v51 = vld [vmem:[%s1410_s30 + $0x10] sm:$0xff]  }
  0x1d   : > { %s1121_s10 = smin.u32 %s1394_s22, %s451_s8  ;;  %1233 = vmatprep.subr.bf16.mxu1 %v1329_v49  ;;  %v1332_v52 = vld [vmem:[%s1410_s30 + $0x18] sm:$0xff]   ;;  %v1333_v56 = vld [vmem:[%s1410_s30 + $0x20] sm:$0xff]   ;;  %v1334_v57 = vld [vmem:[%s1410_s30 + $0x28] sm:$0xff]   ;;  %p1146_p7 = scmp.ne.s32.totalorder %s1394_s22, 4 }
  0x1e   : > { %s453_s11 = sand.u32 1, %s1121_s10   ;;  %1234 = vmatpush3.bf16.msra.mxu1 %v1329_v49  ;;  %v476_v1 = vld [vmem:[#allocation2 + $0x18] sm:$0xff]  ;;  %v477_v2 = vld [vmem:[#allocation2 + $0x20] sm:$0xff]  ;;  %v478_v3 = vld [vmem:[#allocation2 + $0x28] sm:$0xff] }
  0x1f   : > { %s454_s13 = ssub.s32 0, %s453_s11  ;;  %1235 = vmatprep.subr.bf16.mxu1 %v1330_v50  ;;  %v479_v4 = vld [vmem:[#allocation2 + $0x30] sm:$0xff]  ;;  %v1336_v7 = vld [vmem:[%s1410_s30 + $0x38] sm:$0xff]   ;;  %v1337_v8 = vld [vmem:[%s1415_s9] sm:$0xff]  }
  0x20   : > { %s1666_s13 = smov (!%p450_p5, %s454_s13), %s453_s11  ;;  %v480_v5 = vld [vmem:[#allocation2 + $0x38] sm:$0xff]  ;;  %v1335_v6 = vld [vmem:[%s1410_s30 + $0x30] sm:$0xff]   ;;  %v1338_v9 = vld [vmem:[%s1415_s9 + $0x8] sm:$0xff]  }
  0x21   : > { %v473_v48 = vld [vmem:[#allocation2] sm:$0xff]  ;;  %p1123_p6 = scmp.lt.s32.totalorder %s1666_s13, 0  ;;  %s460_s14 = sadd.s32 2, %s1666_s13  ;;  %v1339_v10 = vld [vmem:[%s1415_s9 + $0x10] sm:$0xff]   ;;  %v1340_v11 = vld [vmem:[%s1415_s9 + $0x18] sm:$0xff]  }
  0x22   : > { %1217 = vmatprep.mubr.bf16.mxu0 %v473_v48  ;;  %1236 = vmatpush3.bf16.msra.mxu1 %v1330_v50  ;;  %v474_v63 = vld [vmem:[#allocation2 + $0x8] sm:$0xff]  ;;  %v1545_v12 = vld [vmem:[%s1415_s9 + $0x20] sm:$0xff]  }
  0x23   : > { %s1668_s14 = smov (!%p1123_p6, %s460_s14), %s1666_s13  ;;  %1237 = vmatprep.subr.bf16.mxu1 %v1331_v51  ;;  %v475_v0 = vld [vmem:[#allocation2 + $0x10] sm:$0xff]  ;;  %v1549_v13 = vld [vmem:[%s1415_s9 + $0x28] sm:$0xff]  }
  0x24   : > { %s1151_s15 = sshll.u32 %s1668_s14, 6  ;;  %s1002_s18 = ssub.s32 1, %s1668_s14 }
  0x25   : > { %s464_s16 = scalar_lea.vmem [#allocation3], %s1151_s15  ;;  %s1152_s19 = sshll.u32 %s1002_s18, 6 }
  0x26   : > { %v1504_v53 = vld [vmem:[%s464_s16] sm:$0xff]  ;;  %v1506_v54 = vld [vmem:[%s464_s16 + $0x8] sm:$0xff]  ;;  %v1510_v55 = vld [vmem:[%s464_s16 + $0x10] sm:$0xff]  ;;  %1238 = vmatpush3.bf16.msra.mxu1 %v1331_v51  ;;  %s1596_s23 = scalar_lea.vmem [#allocation3], %s1152_s19 }
  0x27   : > { %1201 = vmatprep.subr.bf16.mxu0 %v1504_v53  ;;  %1239 = vmatprep.subr.bf16.mxu1 %v1332_v52  ;;  %v1517_v58 = vld [vmem:[%s464_s16 + $0x18] sm:$0xff]  ;;  %v1521_v59 = vld [vmem:[%s464_s16 + $0x20] sm:$0xff]  ;;  %v1525_v60 = vld [vmem:[%s464_s16 + $0x28] sm:$0xff]  ;;  %v580_v14 = vunpack.c.l.bf16 %v1506_v54  ;;  %v581_v15 = vunpack.c.h.bf16 %v1506_v54  ;;  %v578_v17 = vunpack.c.l.bf16 %v1504_v53  ;;  %v579_v18 = vunpack.c.h.bf16 %v1504_v53 }
  0x28   : > { %1202 = vmatpush3.bf16.msra.mxu0 %v1504_v53  ;;  %v1529_v61 = vld [vmem:[%s464_s16 + $0x30] sm:$0xff]  ;;  %v1533_v62 = vld [vmem:[%s464_s16 + $0x38] sm:$0xff]  ;;  %v584_v28 = vunpack.c.l.bf16 %v1517_v58  ;;  %v585_v29 = vunpack.c.h.bf16 %v1517_v58  ;;  %v582_v31 = vunpack.c.l.bf16 %v1510_v55  ;;  %v583_v32 = vunpack.c.h.bf16 %v1510_v55 }
  0x29   : > { %1203 = vmatprep.subr.bf16.mxu0 %v1506_v54  ;;  %v588_v42 = vunpack.c.l.bf16 %v1525_v60  ;;  %v589_v43 = vunpack.c.h.bf16 %v1525_v60  ;;  %v586_v45 = vunpack.c.l.bf16 %v1521_v59  ;;  %v587_v46 = vunpack.c.h.bf16 %v1521_v59 }
  0x2a   : > { %1240 = vmatpush3.bf16.msra.mxu1 %v1332_v52 }
  0x2b   : > { %1241 = vmatprep.subr.bf16.mxu1 %v1333_v56 }
  0x2c   : > { %1204 = vmatpush3.bf16.msra.mxu0 %v1506_v54 }
  0x2d   : > { %1205 = vmatprep.subr.bf16.mxu0 %v1510_v55 }
  0x2e   : > { %1242 = vmatpush3.bf16.msra.mxu1 %v1333_v56  ;;  %v592_v56 = vunpack.c.l.bf16 %v1533_v62 }
  0x2f   : > { %1243 = vmatprep.subr.bf16.mxu1 %v1334_v57 }
  0x30   : > { %1206 = vmatpush3.bf16.msra.mxu0 %v1510_v55 }
  0x31   : > { %1207 = vmatprep.subr.bf16.mxu0 %v1517_v58 }
  0x32   : > { %1244 = vmatpush3.bf16.msra.mxu1 %v1334_v57  ;;  %v593_v57 = vunpack.c.h.bf16 %v1533_v62 }
  0x33   : > { %1245 = vmatprep.subr.bf16.mxu1 %v1335_v6 }
  0x34   : > { %1208 = vmatpush3.bf16.msra.mxu0 %v1517_v58 }
  0x35   : > { %1209 = vmatprep.subr.bf16.mxu0 %v1521_v59 }
  0x36   : > { %1246 = vmatpush3.bf16.msra.mxu1 %v1335_v6 }
  0x37   : > { %1247 = vmatprep.subr.bf16.mxu1 %v1336_v7 }
  0x38   : > { %1210 = vmatpush3.bf16.msra.mxu0 %v1521_v59  ;;  %v590_v59 = vunpack.c.l.bf16 %v1529_v61 }
  0x39   : > { %1211 = vmatprep.subr.bf16.mxu0 %v1525_v60 }
  0x3a   : > { %1248 = vmatpush3.bf16.msra.mxu1 %v1336_v7  ;;  %v1344_v7 = vld [vmem:[%s1415_s9 + $0x38] sm:$0xff]  }
  0x3b   : > { %1297 = vmatprep.subr.bf16.mxu1 %v1337_v8 }
  0x3c   : > { %1212 = vmatpush3.bf16.msra.mxu0 %v1525_v60  ;;  %v591_v60 = vunpack.c.h.bf16 %v1529_v61 }
  0x3d   : > { %1213 = vmatprep.subr.bf16.mxu0 %v1529_v61 }
  0x40   : > { %1214 = vmatpush3.bf16.msra.mxu0 %v1529_v61  ;;  %v1343_v61 = vld [vmem:[%s1415_s9 + $0x30] sm:$0xff]  }
  0x41   : > { %1215 = vmatprep.subr.bf16.mxu0 %v1533_v62 }
  0x44   : > { %1216 = vmatpush3.bf16.msra.mxu0 %v1533_v62 }
  0x45   : > { %1265 = vmatprep.subr.bf16.mxu0 %v1337_v8 }
  0x47   : > { %1218 = vmatmul.mubr.bf16.vlgmr.msra.gmra.mrb[0].mxu0 %v474_v63 }
  0x48   : > { %1221 = vmatprep.mubr.bf16.mxu0 %v475_v0  ;;  %1266 = vmatpush3.bf16.msra.mxu0 %v1337_v8 }
  0x49   : > { %1267 = vmatprep.subr.bf16.mxu0 %v1338_v9 }
  0x4c   : > { %1268 = vmatpush3.bf16.msra.mxu0 %v1338_v9 }
  0x4d   : > { %1269 = vmatprep.subr.bf16.mxu0 %v1339_v10 }
  0x4f   : > { %1222 = vmatmul.mubr.bf16.gmra.mrb[4].mxu0 %v476_v1 }
  0x50   : > { %1225 = vmatprep.mubr.bf16.mxu0 %v477_v2  ;;  %1270 = vmatpush3.bf16.msra.mxu0 %v1339_v10 }
  0x51   : > { %1271 = vmatprep.subr.bf16.mxu0 %v1340_v11 }
  0x54   : > { %1272 = vmatpush3.bf16.msra.mxu0 %v1340_v11 }
  0x55   : > { %1273 = vmatprep.subr.bf16.mxu0 %v1545_v12 }
  0x57   : > { %1226 = vmatmul.mubr.bf16.gmra.mrb[8].mxu0 %v478_v3 }
  0x58   : > { %1229 = vmatprep.mubr.bf16.mxu0 %v479_v4  ;;  %1274 = vmatpush3.bf16.msra.mxu0 %v1545_v12 }
  0x59   : > { %1275 = vmatprep.subr.bf16.mxu0 %v1549_v13 }
  0x5c   : > { %1276 = vmatpush3.bf16.msra.mxu0 %v1549_v13 }
  0x5d   : > { %1277 = vmatprep.subr.bf16.mxu0 %v1343_v61 }
  0x5f   : > { %1230 = vmatmul.mubr.bf16.gmra.mrb[12].mxu0 %v480_v5 }
  0x60   : > { %1278 = vmatpush3.bf16.msra.mxu0 %v1343_v61 }
  0x61   : > { %1279 = vmatprep.subr.bf16.mxu0 %v1344_v7 }
  0x64   : > { %1280 = vmatpush3.bf16.msra.mxu0 %v1344_v7 }
 0x11a   : > { %v1219_v16 = vpop.f32.mrb[0].mxu0 }
 0x11b   : > { %v515_v19 = vpop.f32.mrb[1].mxu0  ;;  %v596_v21 = vadd.f32 %v1219_v16, %v580_v14 }
 0x11c   : > { %v1220_v20 = vpop.f32.mrb[2].mxu0  ;;  %v594_v24 = vadd.f32 %v578_v17, %v515_v19 }
 0x11d   : > { %v597_v22 = vadd.f32 %v1220_v20, %v581_v15  ;;  %v518_v23 = vpop.f32.mrb[3].mxu0 }
 0x11e   : > { %v595_v25 = vadd.f32 %v579_v18, %v518_v23 }
 0x11f   : > { %v611_v26 = vpack.c.bf16 %v597_v22, %v596_v21 }
 0x120   : > { %v610_v27 = vpack.c.bf16 %v595_v25, %v594_v24 }
 0x122   : > { %v1223_v30 = vpop.f32.mrb[4].mxu0  ;;  %1249 = vmatprep.mubr.bf16.mxu1 %v610_v27 }
 0x123   : > { %v531_v33 = vpop.f32.mrb[5].mxu0  ;;  %1250 = vmatmul.mubr.bf16.vlgmr.msra.gmra.mrb[0].mxu1 %v611_v26  ;;  %v600_v35 = vadd.f32 %v1223_v30, %v584_v28 }
 0x124   : > { %v1224_v34 = vpop.f32.mrb[6].mxu0  ;;  %1305 = vmatpush3.bf16.msra.mxu1 %v1337_v8  ;;  %v598_v38 = vadd.f32 %v582_v31, %v531_v33  ;;  %v1126_v8 = vld [vmem:[%s276_s27] ss:$0 sm:$0xff] }
 0x125   : > { %v601_v36 = vadd.f32 %v1224_v34, %v585_v29  ;;  %v534_v37 = vpop.f32.mrb[7].mxu0  ;;  %1298 = vmatprep.subr.bf16.mxu1 %v1338_v9 }
 0x126   : > { %v599_v39 = vadd.f32 %v583_v32, %v534_v37 }
 0x127   : > { %v613_v40 = vpack.c.bf16 %v601_v36, %v600_v35 }
 0x128   : > { %v612_v41 = vpack.c.bf16 %v599_v39, %v598_v38  ;;  %1306 = vmatpush3.bf16.msra.mxu1 %v1338_v9 }
 0x129   : > { %1299 = vmatprep.subr.bf16.mxu1 %v1339_v10 }
 0x12a   : > { %v1227_v44 = vpop.f32.mrb[8].mxu0  ;;  %1253 = vmatprep.mubr.bf16.mxu1 %v612_v41 }
 0x12b   : > { %v547_v47 = vpop.f32.mrb[9].mxu0  ;;  %1254 = vmatmul.mubr.bf16.gmra.mrb[4].mxu1 %v613_v40  ;;  %v604_v49 = vadd.f32 %v1227_v44, %v588_v42 }
 0x12c   : > { %v1228_v48 = vpop.f32.mrb[10].mxu0  ;;  %1307 = vmatpush3.bf16.msra.mxu1 %v1339_v10  ;;  %v602_v52 = vadd.f32 %v586_v45, %v547_v47 }
 0x12d   : > { %v605_v50 = vadd.f32 %v1228_v48, %v589_v43  ;;  %v550_v51 = vpop.f32.mrb[11].mxu0  ;;  %1300 = vmatprep.subr.bf16.mxu1 %v1340_v11 }
 0x12e   : > { %v603_v53 = vadd.f32 %v587_v46, %v550_v51 }
 0x12f   : > { %v615_v54 = vpack.c.bf16 %v605_v50, %v604_v49 }
 0x130   : > { %v614_v55 = vpack.c.bf16 %v603_v53, %v602_v52  ;;  %1308 = vmatpush3.bf16.msra.mxu1 %v1340_v11 }
 0x131   : > { %1301 = vmatprep.subr.bf16.mxu1 %v1545_v12 }
 0x132   : > { %v1231_v58 = vpop.f32.mrb[12].mxu0  ;;  %1257 = vmatprep.mubr.bf16.mxu1 %v614_v55 }
 0x133   : > { %v563_v63 = vpop.f32.mrb[13].mxu0  ;;  %1258 = vmatmul.mubr.bf16.gmra.mrb[8].mxu1 %v615_v54  ;;  %v608_v1 = vadd.f32 %v1231_v58, %v592_v56 }
 0x134   : > { %v1232_v0 = vpop.f32.mrb[14].mxu0  ;;  %1309 = vmatpush3.bf16.msra.mxu1 %v1545_v12  ;;  %v606_v62 = vadd.f32 %v590_v59, %v563_v63 }
 0x135   : > { %v609_v2 = vadd.f32 %v1232_v0, %v593_v57  ;;  %v566_v3 = vpop.f32.mrb[15].mxu0  ;;  %1302 = vmatprep.subr.bf16.mxu1 %v1549_v13 }
 0x136   : > { %v607_v4 = vadd.f32 %v591_v60, %v566_v3  ;;  %v1135_v3 = vld [vmem:[%s284_s12] ss:$0 sm:$0xff] }
 0x137   : > { %v617_v5 = vpack.c.bf16 %v609_v2, %v608_v1 }
 0x138   : > { %v616_v6 = vpack.c.bf16 %v607_v4, %v606_v62  ;;  %1310 = vmatpush3.bf16.msra.mxu1 %v1549_v13 }
 0x139   : > { %1303 = vmatprep.subr.bf16.mxu1 %v1343_v61 }
 0x13a   : > { %1261 = vmatprep.mubr.bf16.mxu1 %v616_v6 }
 0x13b   : > { %1262 = vmatmul.mubr.bf16.gmra.mrb[12].mxu1 %v617_v5 }
 0x13c   : > { %1311 = vmatpush3.bf16.msra.mxu1 %v1343_v61 }
 0x13d   : > { %1304 = vmatprep.subr.bf16.mxu1 %v1344_v7 }
 0x140   : > { %1312 = vmatpush3.bf16.msra.mxu1 %v1344_v7 }
 0x1f6   : > { %v1251_v9 = vpop.f32.mrb[0].mxu1 }
 0x1f7   : > { %v732_v10 = vadd.f32 %v1251_v9, %v1126_v8  ;;  %v723_v11 = vpop.f32.mrb[1].mxu1 }
 0x1f8   : > { %v724_v12 = vadd.f32 %v1126_v8, %v723_v11  ;;  %v1252_v13 = vpop.f32.mrb[2].mxu1 }
 0x1f9   : > { %v735_v14 = vadd.f32 %v1252_v13, %v1126_v8  ;;  %v726_v15 = vpop.f32.mrb[3].mxu1  ;;  %v788_v17 = vmax.f32 %v732_v10, 0.0 }
 0x1fa   : > { %v727_v16 = vadd.f32 %v1126_v8, %v726_v15  ;;  %v786_v19 = vmax.f32 %v724_v12, 0.0 }
 0x1fb   : > { %v789_v18 = vmax.f32 %v735_v14, 0.0 }
 0x1fc   : > { %v787_v20 = vmax.f32 %v727_v16, 0.0 }
 0x1fd   : > { %v803_v21 = vpack.c.bf16 %v789_v18, %v788_v17 }
 0x1fe   : > { %v802_v22 = vpack.c.bf16 %v787_v20, %v786_v19  ;;  %v1255_v23 = vpop.f32.mrb[4].mxu1 }
 0x1ff   : > { %v748_v24 = vadd.f32 %v1255_v23, %v1126_v8  ;;  %v739_v25 = vpop.f32.mrb[5].mxu1 }
 0x200   : > { %v740_v26 = vadd.f32 %v1126_v8, %v739_v25  ;;  %v1256_v27 = vpop.f32.mrb[6].mxu1  ;;  %1281 = vmatprep.mubr.bf16.mxu0 %v802_v22 }
 0x201   : > { %v751_v28 = vadd.f32 %v1256_v27, %v1126_v8  ;;  %v742_v29 = vpop.f32.mrb[7].mxu1  ;;  %1282 = vmatmul.mubr.bf16.vlgmr.msra.gmra.mrb[16].mxu0 %v803_v21  ;;  %v792_v31 = vmax.f32 %v748_v24, 0.0 }
 0x202   : > { %v743_v30 = vadd.f32 %v1126_v8, %v742_v29  ;;  %v790_v33 = vmax.f32 %v740_v26, 0.0 }
 0x203   : > { %v793_v32 = vmax.f32 %v751_v28, 0.0 }
 0x204   : > { %v791_v34 = vmax.f32 %v743_v30, 0.0 }
 0x205   : > { %v805_v35 = vpack.c.bf16 %v793_v32, %v792_v31 }
 0x206   : > { %v804_v36 = vpack.c.bf16 %v791_v34, %v790_v33  ;;  %v1259_v37 = vpop.f32.mrb[8].mxu1 }
 0x207   : > { %v764_v38 = vadd.f32 %v1259_v37, %v1126_v8  ;;  %v755_v39 = vpop.f32.mrb[9].mxu1 }
 0x208   : > { %v756_v40 = vadd.f32 %v1126_v8, %v755_v39  ;;  %v1260_v41 = vpop.f32.mrb[10].mxu1  ;;  %1285 = vmatprep.mubr.bf16.mxu0 %v804_v36 }
 0x209   : > { %v767_v42 = vadd.f32 %v1260_v41, %v1126_v8  ;;  %v758_v43 = vpop.f32.mrb[11].mxu1  ;;  %1286 = vmatmul.mubr.bf16.gmra.mrb[20].mxu0 %v805_v35  ;;  %v796_v45 = vmax.f32 %v764_v38, 0.0 }
 0x20a   : > { %v759_v44 = vadd.f32 %v1126_v8, %v758_v43  ;;  %v794_v47 = vmax.f32 %v756_v40, 0.0 }
 0x20b   : > { %v797_v46 = vmax.f32 %v767_v42, 0.0 }
 0x20c   : > { %v795_v48 = vmax.f32 %v759_v44, 0.0 }
 0x20d   : > { %v807_v49 = vpack.c.bf16 %v797_v46, %v796_v45 }
 0x20e   : > { %v806_v50 = vpack.c.bf16 %v795_v48, %v794_v47  ;;  %v1263_v51 = vpop.f32.mrb[12].mxu1 }
 0x20f   : > { %v780_v52 = vadd.f32 %v1263_v51, %v1126_v8  ;;  %v771_v53 = vpop.f32.mrb[13].mxu1 }
 0x210   : > { %v772_v54 = vadd.f32 %v1126_v8, %v771_v53  ;;  %v1264_v55 = vpop.f32.mrb[14].mxu1  ;;  %1289 = vmatprep.mubr.bf16.mxu1 %v806_v50 }
 0x211   : > { %v783_v56 = vadd.f32 %v1264_v55, %v1126_v8  ;;  %v774_v57 = vpop.f32.mrb[15].mxu1  ;;  %1290 = vmatmul.mubr.bf16.vlgmr.msra.gmra.mrb[16].mxu1 %v807_v49  ;;  %v800_v59 = vmax.f32 %v780_v52, 0.0 }
 0x212   : > { %v775_v58 = vadd.f32 %v1126_v8, %v774_v57  ;;  %v798_v63 = vmax.f32 %v772_v54, 0.0 }
 0x213   : > { %v801_v60 = vmax.f32 %v783_v56, 0.0 }
 0x214   : > { %v799_v0 = vmax.f32 %v775_v58, 0.0 }
 0x215   : > { %v809_v1 = vpack.c.bf16 %v801_v60, %v800_v59 }
 0x216   : > { %v808_v2 = vpack.c.bf16 %v799_v0, %v798_v63 }
 0x218   : > { %1293 = vmatprep.mubr.bf16.mxu1 %v808_v2 }
 0x219   : > { %1294 = vmatmul.mubr.bf16.gmra.mrb[20].mxu1 %v809_v1 }
 0x2d4   : > { %v1283_v62 = vpop.f32.mrb[16].mxu0 }
 0x2d5   : > { %v1587_v4 = vadd.f32 %v1283_v62, %v1135_v3  ;;  %v915_v5 = vpop.f32.mrb[17].mxu0 }
 0x2d6   : > { %v1589_v6 = vadd.f32 %v1135_v3, %v915_v5  ;;  %v1284_v61 = vpop.f32.mrb[18].mxu0 }
 0x2d7   : > { %v1591_v7 = vadd.f32 %v1284_v61, %v1135_v3  ;;  %v918_v8 = vpop.f32.mrb[19].mxu0  ;;  %v980_v10 = vmax.f32 %v1587_v4, 0.0 }
 0x2d8   : > { %v919_v9 = vadd.f32 %v1135_v3, %v918_v8  ;;  %v978_v12 = vmax.f32 %v1589_v6, 0.0 }
 0x2d9   : > { %v981_v11 = vmax.f32 %v1591_v7, 0.0  ;;  %1020 = vst [vmem:[%s1664_s6 + $0x10] sm:$0xff] (!%p1146_p7), %v980_v10 }
 0x2da   : > { %v979_v13 = vmax.f32 %v919_v9, 0.0  ;;  %1018 = vst [vmem:[%s1664_s6] sm:$0xff] (!%p1146_p7), %v978_v12 }
 0x2db   : > { %v995_v14 = vpack.c.bf16 %v981_v11, %v980_v10  ;;  %1021 = vst [vmem:[%s1664_s6 + $0x18] sm:$0xff] (!%p1146_p7), %v981_v11 }
 0x2dc   : > { %v994_v15 = vpack.c.bf16 %v979_v13, %v978_v12  ;;  %v1287_v16 = vpop.f32.mrb[20].mxu0  ;;  %1019 = vst [vmem:[%s1664_s6 + $0x8] sm:$0xff] (!%p1146_p7), %v979_v13 }
 0x2dd   : > { %1007 = vst [vmem:[%s1596_s23 + $0x8] sm:$0xff] %v995_v14  ;;  %v940_v17 = vadd.f32 %v1287_v16, %v1135_v3  ;;  %v931_v18 = vpop.f32.mrb[21].mxu0 }
 0x2de   : > { %1006 = vst [vmem:[%s1596_s23] sm:$0xff] %v994_v15  ;;  %v932_v19 = vadd.f32 %v1135_v3, %v931_v18  ;;  %v1288_v20 = vpop.f32.mrb[22].mxu0 }
 0x2df   : > { %v943_v21 = vadd.f32 %v1288_v20, %v1135_v3  ;;  %v934_v22 = vpop.f32.mrb[23].mxu0  ;;  %v984_v24 = vmax.f32 %v940_v17, 0.0 }
 0x2e0   : > { %v935_v23 = vadd.f32 %v1135_v3, %v934_v22  ;;  %v982_v26 = vmax.f32 %v932_v19, 0.0 }
 0x2e1   : > { %v985_v25 = vmax.f32 %v943_v21, 0.0  ;;  %1024 = vst [vmem:[%s1664_s6 + $0x30] sm:$0xff] (!%p1146_p7), %v984_v24 }
 0x2e2   : > { %v983_v27 = vmax.f32 %v935_v23, 0.0  ;;  %1022 = vst [vmem:[%s1664_s6 + $0x20] sm:$0xff] (!%p1146_p7), %v982_v26 }
 0x2e3   : > { %v997_v28 = vpack.c.bf16 %v985_v25, %v984_v24  ;;  %1025 = vst [vmem:[%s1664_s6 + $0x38] sm:$0xff] (!%p1146_p7), %v985_v25 }
 0x2e4   : > { %v996_v29 = vpack.c.bf16 %v983_v27, %v982_v26  ;;  %v1291_v30 = vpop.f32.mrb[16].mxu1  ;;  %1023 = vst [vmem:[%s1664_s6 + $0x28] sm:$0xff] (!%p1146_p7), %v983_v27 }
 0x2e5   : > { %1009 = vst [vmem:[%s1596_s23 + $0x18] sm:$0xff] %v997_v28  ;;  %v956_v31 = vadd.f32 %v1291_v30, %v1135_v3  ;;  %v947_v32 = vpop.f32.mrb[17].mxu1 }
 0x2e6   : > { %1008 = vst [vmem:[%s1596_s23 + $0x10] sm:$0xff] %v996_v29  ;;  %v948_v33 = vadd.f32 %v1135_v3, %v947_v32  ;;  %v1292_v34 = vpop.f32.mrb[18].mxu1 }
 0x2e7   : > { %v959_v35 = vadd.f32 %v1292_v34, %v1135_v3  ;;  %v950_v36 = vpop.f32.mrb[19].mxu1  ;;  %v988_v38 = vmax.f32 %v956_v31, 0.0 }
 0x2e8   : > { %v951_v37 = vadd.f32 %v1135_v3, %v950_v36  ;;  %v986_v40 = vmax.f32 %v948_v33, 0.0 }
 0x2e9   : > { %v989_v39 = vmax.f32 %v959_v35, 0.0  ;;  %1028 = vst [vmem:[%s1664_s6 + $0x50] sm:$0xff] (!%p1146_p7), %v988_v38 }
 0x2ea   : > { %v987_v41 = vmax.f32 %v951_v37, 0.0  ;;  %1026 = vst [vmem:[%s1664_s6 + $0x40] sm:$0xff] (!%p1146_p7), %v986_v40 }
 0x2eb   : > { %v999_v42 = vpack.c.bf16 %v989_v39, %v988_v38  ;;  %1029 = vst [vmem:[%s1664_s6 + $0x58] sm:$0xff] (!%p1146_p7), %v989_v39 }
 0x2ec   : > { %v998_v43 = vpack.c.bf16 %v987_v41, %v986_v40  ;;  %v1295_v44 = vpop.f32.mrb[20].mxu1  ;;  %1027 = vst [vmem:[%s1664_s6 + $0x48] sm:$0xff] (!%p1146_p7), %v987_v41 }
 0x2ed   : > { %1011 = vst [vmem:[%s1596_s23 + $0x28] sm:$0xff] %v999_v42  ;;  %v972_v45 = vadd.f32 %v1295_v44, %v1135_v3  ;;  %v963_v46 = vpop.f32.mrb[21].mxu1 }
 0x2ee   : > { %1010 = vst [vmem:[%s1596_s23 + $0x20] sm:$0xff] %v998_v43  ;;  %v964_v47 = vadd.f32 %v1135_v3, %v963_v46  ;;  %v1296_v48 = vpop.f32.mrb[22].mxu1 }
 0x2ef   : > { %v975_v49 = vadd.f32 %v1296_v48, %v1135_v3  ;;  %v966_v50 = vpop.f32.mrb[23].mxu1  ;;  %v992_v52 = vmax.f32 %v972_v45, 0.0 }
 0x2f0   : > { %v967_v51 = vadd.f32 %v1135_v3, %v966_v50  ;;  %v990_v54 = vmax.f32 %v964_v47, 0.0  ;;  %1017 = sbr.rel (%p1146_p7) target bundleno = 759 (0x2f7), region = 52 }
 0x2f1   : > { %v993_v53 = vmax.f32 %v975_v49, 0.0  ;;  %1032 = vst [vmem:[%s1664_s6 + $0x70] sm:$0xff] (!%p1146_p7), %v992_v52 }
 0x2f2   : > { %v991_v55 = vmax.f32 %v967_v51, 0.0  ;;  %1030 = vst [vmem:[%s1664_s6 + $0x60] sm:$0xff] (!%p1146_p7), %v990_v54 }
 0x2f3   : > { %v1001_v56 = vpack.c.bf16 %v993_v53, %v992_v52  ;;  %1033 = vst [vmem:[%s1664_s6 + $0x78] sm:$0xff] (!%p1146_p7), %v993_v53 }
 0x2f4   : > { %v1000_v57 = vpack.c.bf16 %v991_v55, %v990_v54  ;;  %1031 = vst [vmem:[%s1664_s6 + $0x68] sm:$0xff] (!%p1146_p7), %v991_v55 }
 0x2f5   : > { %1013 = vst [vmem:[%s1596_s23 + $0x38] sm:$0xff] %v1001_v56 }
 0x2f6   : > { %1012 = vst [vmem:[%s1596_s23 + $0x30] sm:$0xff] %v1000_v57 }
 0x2f7 PF: > { %s16_s21 = sadd.s32 1, %s1351_s21  }
 0x2f8   : > { %p13_p8 = scmp.ge.s32.totalorder %s16_s21, 7  }
 0x2fa   :  { %15 = sbr.rel (!%p13_p8) target bundleno = 1 (0x1), region = 89 }

</bundles_post_ra>
